<compile_context>
chip_gen: v5e
topology: v5e:2x2
jax: 0.10.0
libtpu: 0.0.40
codegen_flags: <defaults>
</compile_context>

<pallas_src>
import jax
import jax.numpy as jnp
from jax.experimental import pallas as pl
from jax.experimental.pallas import tpu as pltpu


def _policy_kernel(x_ref, w1_ref, b1_ref, w2_ref, b2_ref, w3_ref, b3_ref, out_ref):
    # Cast f32 activations to bf16 on-chip (VPU) right before each MXU dot;
    # accumulate in f32 via preferred_element_type.
    x_bf = x_ref[...].astype(jnp.bfloat16)
    # Layer 1: Linear(obs_dim, 64) + ReLU
    h1 = jnp.dot(x_bf, w1_ref[...], preferred_element_type=jnp.float32)
    h1 = jnp.maximum(h1 + b1_ref[...], 0.0)
    # Layer 2: Linear(64, 32) + ReLU
    h2 = jnp.dot(h1.astype(jnp.bfloat16), w2_ref[...],
                 preferred_element_type=jnp.float32)
    h2 = jnp.maximum(h2 + b2_ref[...], 0.0)
    # Layer 3: Linear(32, action_dim) + Sigmoid
    logits = jnp.dot(h2.astype(jnp.bfloat16), w3_ref[...],
                     preferred_element_type=jnp.float32)
    out_ref[...] = jax.nn.sigmoid(logits + b3_ref[...])


def _pick_tile(B, tile_b):
    """Batch tile: single full block for small B, otherwise a multiple-of-8 tile
    capped so the grid has at least 2 steps (keeps both v7x TCs busy)."""
    if B <= tile_b:
        return B                       # block dims == array dims -> always legal
    half = -(-B // 2)                  # cdiv(B, 2)
    half = -(-half // 8) * 8           # round up to sublane multiple
    return min(tile_b, half)


def hierarchical_policy(x, params, tile_b=4096):
    """x: (B, obs_dim) float32. params: dict of f32 weights/biases.

    Returns (B, action_dim) float32.
    """
    # Weights are tiny (<= obs_dim*64 elems); casting them once per call is noise.
    w1 = params["w1"].astype(jnp.bfloat16)
    w2 = params["w2"].astype(jnp.bfloat16)
    w3 = params["w3"].astype(jnp.bfloat16)
    b1, b2, b3 = params["b1"], params["b2"], params["b3"]

    B, obs_dim = x.shape
    action_dim = w3.shape[1]

    tb = _pick_tile(B, tile_b)
    grid = (pl.cdiv(B, tb),)           # ragged last block handled by Pallas masking

    # Weights/biases: full blocks with constant index_maps -> resident in VMEM.
    resident = lambda arr: pl.BlockSpec(arr.shape, lambda i: (0,) * arr.ndim)

    cost = pl.CostEstimate(
        flops=2 * B * (obs_dim * 64 + 64 * 32 + 32 * action_dim),
        transcendentals=B * action_dim,
        bytes_accessed=(B * obs_dim * 4                       # x (f32, single HBM pass)
                        + B * action_dim * 4                  # out (f32)
                        + (obs_dim * 64 + 64 * 32 + 32 * action_dim) * 2
                        + (64 + 32 + action_dim) * 4),
    )

    return pl.pallas_call(
        _policy_kernel,
        out_shape=jax.ShapeDtypeStruct((B, action_dim), jnp.float32),
        grid=grid,
        in_specs=[
            pl.BlockSpec((tb, obs_dim), lambda i: (i, 0)),    # x: tiled over batch
            resident(w1), resident(b1),
            resident(w2), resident(b2),
            resident(w3), resident(b3),
        ],
        out_specs=pl.BlockSpec((tb, action_dim), lambda i: (i, 0)),
        compiler_params=pltpu.CompilerParams(
            dimension_semantics=("parallel",),                # batch axis -> v7x megacore
            vmem_limit_bytes=48 * 1024 * 1024,                # headroom for tb=4096 tiles
        ),
        cost_estimate=cost,
    )(x, w1, b1, w2, b2, w3, b3)


def init_params(key, obs_dim, action_dim):
    """Deterministic synthetic init (uniform, PyTorch default Linear init scale)."""
    ks = jax.random.split(key, 6)

    def lin(kw, kb, fan_in, fan_out):
        bound = 1.0 / jnp.sqrt(jnp.float32(fan_in))
        w = jax.random.uniform(kw, (fan_in, fan_out), jnp.float32, -bound, bound)
        b = jax.random.uniform(kb, (1, fan_out), jnp.float32, -bound, bound)
        return w, b

    w1, b1 = lin(ks[0], ks[1], obs_dim, 64)
    w2, b2 = lin(ks[2], ks[3], 64, 32)
    w3, b3 = lin(ks[4], ks[5], 32, action_dim)
    return {"w1": w1, "b1": b1, "w2": w2, "b2": b2, "w3": w3, "b3": b3}


def _reference(x, p):
    h1 = jnp.maximum(x @ p["w1"] + p["b1"], 0.0)
    h2 = jnp.maximum(h1 @ p["w2"] + p["b2"], 0.0)
    return jax.nn.sigmoid(h2 @ p["w3"] + p["b3"])


if __name__ == "__main__":
    obs_dim, action_dim = 32, 8
    key = jax.random.PRNGKey(0)
    kx, kp, kx2 = jax.random.split(key, 3)
    params = init_params(kp, obs_dim, action_dim)

    # Small-shape check (single full-batch block).
    x_small = jax.random.normal(kx, (2, obs_dim), jnp.float32)
    out_small = jax.block_until_ready(hierarchical_policy(x_small, params))
    ref_small = _reference(x_small, params)
    assert out_small.shape == (2, action_dim), out_small.shape
    # bf16 MXU inputs -> loosened tolerance vs. the f32 reference.
    assert jnp.allclose(out_small, ref_small, atol=2e-2, rtol=2e-2)

    # Multi-step grid with a ragged last block (no wrapper pad, no output slice).
    x_big = jax.random.normal(kx2, (1000, obs_dim), jnp.float32)
    out_big = jax.block_until_ready(hierarchical_policy(x_big, params, tile_b=512))
    ref_big = _reference(x_big, params)
    assert out_big.shape == (1000, action_dim), out_big.shape
    assert jnp.allclose(out_big, ref_big, atol=2e-2, rtol=2e-2)

    print("KERNEL_OK")
</pallas_src>

<mosaic_0001>
module attributes {stable_mosaic.version = 11 : i64} {
  func.func @_policy_kernel(%arg0: i32, %arg1: memref<2x32xf32, #tpu.memory_space<vmem>>, %arg2: memref<32x64xbf16, #tpu.memory_space<vmem>>, %arg3: memref<1x64xf32, #tpu.memory_space<vmem>>, %arg4: memref<64x32xbf16, #tpu.memory_space<vmem>>, %arg5: memref<1x32xf32, #tpu.memory_space<vmem>>, %arg6: memref<32x8xbf16, #tpu.memory_space<vmem>>, %arg7: memref<1x8xf32, #tpu.memory_space<vmem>>, %arg8: memref<2x8xf32, #tpu.memory_space<vmem>>) attributes {dimension_semantics = [#tpu.dimension_semantics<parallel>], iteration_bounds = array<i64: 1>, scalar_prefetch = 0 : i64, scratch_operands = 0 : i64, tpu.core_type = #tpu.core_type<tc>, window_params = [{transform_indices = @transform_0, window_bounds = array<i64: 2, 32>}, {pipeline_mode = #tpu.pipeline_mode<synchronous>, transform_indices = @transform_1, window_bounds = array<i64: 32, 64>}, {pipeline_mode = #tpu.pipeline_mode<synchronous>, transform_indices = @transform_2, window_bounds = array<i64: 1, 64>}, {pipeline_mode = #tpu.pipeline_mode<synchronous>, transform_indices = @transform_3, window_bounds = array<i64: 64, 32>}, {pipeline_mode = #tpu.pipeline_mode<synchronous>, transform_indices = @transform_4, window_bounds = array<i64: 1, 32>}, {pipeline_mode = #tpu.pipeline_mode<synchronous>, transform_indices = @transform_5, window_bounds = array<i64: 32, 8>}, {pipeline_mode = #tpu.pipeline_mode<synchronous>, transform_indices = @transform_6, window_bounds = array<i64: 1, 8>}, {transform_indices = @transform_7, window_bounds = array<i64: 2, 8>}]} {
    %c0 = arith.constant 0 : index
    %c0_0 = arith.constant 0 : index
    %0 = vector.load %arg1[%c0, %c0_0] : memref<2x32xf32, #tpu.memory_space<vmem>>, vector<2x32xf32>
    %1 = arith.truncf %0 : vector<2x32xf32> to vector<2x32xbf16>
    %c0_1 = arith.constant 0 : index
    %c0_2 = arith.constant 0 : index
    %2 = vector.load %arg2[%c0_1, %c0_2] : memref<32x64xbf16, #tpu.memory_space<vmem>>, vector<32x64xbf16>
    %cst = arith.constant dense<0.000000e+00> : vector<2x64xf32>
    %3 = tpu.matmul %1, %2, %cst {dimension_numbers = #tpu.dot_dimension_numbers<[1], [0], [0], [1], [0, 0, 1, 1], [], []>} : vector<2x32xbf16>, vector<32x64xbf16>, vector<2x64xf32> -> vector<2x64xf32>
    %c0_3 = arith.constant 0 : index
    %c0_4 = arith.constant 0 : index
    %4 = vector.load %arg3[%c0_3, %c0_4] : memref<1x64xf32, #tpu.memory_space<vmem>>, vector<1x64xf32>
    %5 = vector.broadcast %4 : vector<1x64xf32> to vector<2x64xf32>
    %6 = arith.addf %3, %5 : vector<2x64xf32>
    %cst_5 = arith.constant 0.000000e+00 : f32
    %7 = vector.broadcast %cst_5 : f32 to vector<2x64xf32>
    %8 = arith.maximumf %6, %7 : vector<2x64xf32>
    %9 = arith.truncf %8 : vector<2x64xf32> to vector<2x64xbf16>
    %c0_6 = arith.constant 0 : index
    %c0_7 = arith.constant 0 : index
    %10 = vector.load %arg4[%c0_6, %c0_7] : memref<64x32xbf16, #tpu.memory_space<vmem>>, vector<64x32xbf16>
    %cst_8 = arith.constant dense<0.000000e+00> : vector<2x32xf32>
    %11 = tpu.matmul %9, %10, %cst_8 {dimension_numbers = #tpu.dot_dimension_numbers<[1], [0], [0], [1], [0, 0, 1, 1], [], []>} : vector<2x64xbf16>, vector<64x32xbf16>, vector<2x32xf32> -> vector<2x32xf32>
    %c0_9 = arith.constant 0 : index
    %c0_10 = arith.constant 0 : index
    %12 = vector.load %arg5[%c0_9, %c0_10] : memref<1x32xf32, #tpu.memory_space<vmem>>, vector<1x32xf32>
    %13 = vector.broadcast %12 : vector<1x32xf32> to vector<2x32xf32>
    %14 = arith.addf %11, %13 : vector<2x32xf32>
    %cst_11 = arith.constant 0.000000e+00 : f32
    %15 = vector.broadcast %cst_11 : f32 to vector<2x32xf32>
    %16 = arith.maximumf %14, %15 : vector<2x32xf32>
    %17 = arith.truncf %16 : vector<2x32xf32> to vector<2x32xbf16>
    %c0_12 = arith.constant 0 : index
    %c0_13 = arith.constant 0 : index
    %18 = vector.load %arg6[%c0_12, %c0_13] : memref<32x8xbf16, #tpu.memory_space<vmem>>, vector<32x8xbf16>
    %cst_14 = arith.constant dense<0.000000e+00> : vector<2x8xf32>
    %19 = tpu.matmul %17, %18, %cst_14 {dimension_numbers = #tpu.dot_dimension_numbers<[1], [0], [0], [1], [0, 0, 1, 1], [], []>} : vector<2x32xbf16>, vector<32x8xbf16>, vector<2x8xf32> -> vector<2x8xf32>
    %c0_15 = arith.constant 0 : index
    %c0_16 = arith.constant 0 : index
    %20 = vector.load %arg7[%c0_15, %c0_16] : memref<1x8xf32, #tpu.memory_space<vmem>>, vector<1x8xf32>
    %21 = vector.broadcast %20 : vector<1x8xf32> to vector<2x8xf32>
    %22 = arith.addf %19, %21 : vector<2x8xf32>
    %23 = arith.negf %22 : vector<2x8xf32>
    %24 = math.exp %23 : vector<2x8xf32>
    %cst_17 = arith.constant 1.000000e+00 : f32
    %25 = vector.broadcast %cst_17 : f32 to vector<2x8xf32>
    %26 = arith.addf %25, %24 : vector<2x8xf32>
    %27 = arith.divf %25, %26 : vector<2x8xf32>
    %c0_18 = arith.constant 0 : index
    %c0_19 = arith.constant 0 : index
    %28 = vector.load %arg8[%c0_18, %c0_19] : memref<2x8xf32, #tpu.memory_space<vmem>>, vector<2x8xf32>
    tpu.vector_store %arg8[%c0_18, %c0_19], %27 {strides = array<i32>} : memref<2x8xf32, #tpu.memory_space<vmem>>, vector<2x8xf32>,
    return
  }
  func.func @transform_0(%arg0: i32) -> (i32, i32) {
    %c0_i32 = arith.constant 0 : i32
    %c0_i32_0 = arith.constant 0 : i32
    return %arg0, %c0_i32 : i32, i32
  }
  func.func @transform_1(%arg0: i32) -> (i32, i32) {
    %c0_i32 = arith.constant 0 : i32
    %c0_i32_0 = arith.constant 0 : i32
    %c0_i32_1 = arith.constant 0 : i32
    return %c0_i32, %c0_i32_0 : i32, i32
  }
  func.func @transform_2(%arg0: i32) -> (i32, i32) {
    %c0_i32 = arith.constant 0 : i32
    %c0_i32_0 = arith.constant 0 : i32
    %c0_i32_1 = arith.constant 0 : i32
    return %c0_i32, %c0_i32_0 : i32, i32
  }
  func.func @transform_3(%arg0: i32) -> (i32, i32) {
    %c0_i32 = arith.constant 0 : i32
    %c0_i32_0 = arith.constant 0 : i32
    %c0_i32_1 = arith.constant 0 : i32
    return %c0_i32, %c0_i32_0 : i32, i32
  }
  func.func @transform_4(%arg0: i32) -> (i32, i32) {
    %c0_i32 = arith.constant 0 : i32
    %c0_i32_0 = arith.constant 0 : i32
    %c0_i32_1 = arith.constant 0 : i32
    return %c0_i32, %c0_i32_0 : i32, i32
  }
  func.func @transform_5(%arg0: i32) -> (i32, i32) {
    %c0_i32 = arith.constant 0 : i32
    %c0_i32_0 = arith.constant 0 : i32
    %c0_i32_1 = arith.constant 0 : i32
    return %c0_i32, %c0_i32_0 : i32, i32
  }
  func.func @transform_6(%arg0: i32) -> (i32, i32) {
    %c0_i32 = arith.constant 0 : i32
    %c0_i32_0 = arith.constant 0 : i32
    %c0_i32_1 = arith.constant 0 : i32
    return %c0_i32, %c0_i32_0 : i32, i32
  }
  func.func @transform_7(%arg0: i32) -> (i32, i32) {
    %c0_i32 = arith.constant 0 : i32
    %c0_i32_0 = arith.constant 0 : i32
    return %arg0, %c0_i32 : i32, i32
  }
}

</mosaic_0001>

<bundles_post_ra>
// kernel: tpu_custom_call.1
= control target key start
LH: loop header
LB: loop body
LE: loop exit
PB: predicated region body
PF: predicated region fallthrough
CT: control target
= control target key end

     0   :  { %s357_s0 = inlined_call_operand.vmem [shape: f32[2,32], index: 0, kind: input, shape index: {}]   ;;  %s358_s1 = inlined_call_operand.vmem [shape: bf16[32,64], index: 1, kind: input, shape index: {}]   ;;  %s359_s2 = inlined_call_operand.vmem [shape: f32[1,64], index: 2, kind: input, shape index: {}]   ;;  %s360_s3 = inlined_call_operand.vmem [shape: bf16[64,32], index: 3, kind: input, shape index: {}]   ;;  %s361_s4 = inlined_call_operand.vmem [shape: f32[1,32], index: 4, kind: input, shape index: {}]   ;;  %s362_s5 = inlined_call_operand.vmem [shape: bf16[32,8], index: 5, kind: input, shape index: {}]   ;;  %s363_s6 = inlined_call_operand.vmem [shape: f32[1,8], index: 6, kind: input, shape index: {}]   ;;  %s364_s7 = inlined_call_operand.hbm [shape: f32[2,8], index: 7, kind: output, shape index: {}]  }
   0x1   :  { %v234_v0 = vld [vmem:[%s358_s1 + $0x8] sm:$0xff]  ;;  %v233_v1 = vld [vmem:[%s358_s1] sm:$0xff]  ;;  %v238_v2 = vld [vmem:[%s360_s3 + $0x18] sm:$0xff] }
   0x2   :  { %60 = vmatpush.bf16.msra.mxu0 %v234_v0  ;;  %v28_v3 = vld [vmem:[%s357_s0] sm:$0x3]  ;;  %113 = vmatpush.bf16.msra.mxu1 %v238_v2  ;;  %v237_v4 = vld [vmem:[%s360_s3 + $0x10] sm:$0xff] }
   0x3   :  { %12 = vsyncpa [#allocation3], 0  ;;  %v29_v5 = vpack.c.bf16 %v28_v3, %v28_v3  ;;  %vm50_vm0 = vcmask 261120   ;;  %v236_v6 = vld [vmem:[%s360_s3 + $0x8] sm:$0xff]  ;;  %v235_v7 = vld [vmem:[%s360_s3] sm:$0xff]  ;;  %vm105_vm1 = vcmask 523264  }
   0x4   :  { %v242_v8 = vld [vmem:[%s359_s2] ss:$0 sm:$0xff]  ;;  %v240_v14 = vld [vmem:[%s362_s5 + $0x8] sm:$0xff]  ;;  %vm179_vm5 = vcmask 58368  }
   0x5   :  { %153 = vmatpush.bf16.msra.mxu2 %v240_v14  ;;  %v239_v15 = vld [vmem:[%s362_s5] sm:$0xff] }
   0x6   :  { %61 = vmatpush.bf16.msra.mxu0 %v233_v1  ;;  %114 = vmatpush.bf16.msra.mxu1 %v237_v4  ;;  %v243_v16 = vld [vmem:[%s361_s4] ss:$0 sm:$0xff]  ;;  %s275_s4 = smov [#allocation2]  }
   0x7   :  { %v244_v22 = vld [vmem:[%s363_s6] ss:$0 sm:$0xff]  ;;  %s186_s5 = sshll.u32 %s275_s4, 4  ;;  %s188_s6 = sshll.u32 %s364_s7, 4  ;;  %s187_s5 = int_to_ptr.vmem [resolvable:$true] %s186_s5  ;;  %s189_s6 = int_to_ptr.hbm [resolvable:$true] %s188_s6 }
   0x9   :  { %205 = vmatmul.msk.bf16.vlgmr.msra.gmra.mxu0 %vm50_vm0, %v29_v5  ;;  %154 = vmatpush.bf16.msra.mxu2 %v239_v15 }
   0xa   :  { %115 = vmatpush.bf16.msra.mxu1 %v236_v6 }
   0xe   :  { %116 = vmatpush.bf16.msra.mxu1 %v235_v7 }
  0x86   :  { %v63_v9 = vpop.f32.mrf.mxu0 }
  0x87   :  { %v64_v10 = vadd.f32 %v242_v8, %v63_v9 }
  0x89   :  { %v67_v11 = vmax.f32 %v64_v10, 0.0 }
  0x8b   :  { %v68_v12 = vpack.c.bf16 %v67_v11, %v67_v11 }
  0x8d   :  { %222 = vmatmul.msk.bf16.vlgmr.msra.gmra.mxu1 %vm105_vm1, %v68_v12 }
  0x8e   :  { %v65_v13 = vpop.f32.mrf.mxu0 }
 0x10a   :  { %v118_v17 = vpop.f32.mrf.mxu1 }
 0x10b   :  { %v119_v18 = vadd.f32 %v243_v16, %v118_v17 }
 0x10d   :  { %v122_v19 = vmax.f32 %v119_v18, 0.0 }
 0x10f   :  { %v123_v20 = vpack.c.bf16 %v122_v19, %v122_v19 }
 0x111   :  { %231 = vmatmul.msk.bf16.vlgmr.msra.gmra.mxu2 %vm50_vm0, %v123_v20 }
 0x112   :  { %v120_v21 = vpop.f32.mrf.mxu1 }
 0x194   :  { %v156_v23 = vpop.f32.mrf.mxu2 }
 0x195   :  { %v157_v24 = vadd.f32 %v244_v22, %v156_v23 }
 0x197   :  { %v232_v25 = vmul.f32 -1.442695, %v157_v24 }
 0x199   :  { %245 = vpow2.f32 %v232_v25 }
 0x19c   :  { %v158_v26 = vpop.f32.mrf.mxu2 }
 0x19f   :  { %v246_v27 = vpop.eup %245 }
 0x1a0   :  { %v163_v28 = vadd.f32 1.0, %v246_v27 }
 0x1a2   :  { %247 = vrcp.f32 %v163_v28  ;;  %v175_v32 = vand.u32 2147483648, %v163_v28  ;;  %v173_v34 = vand.u32 2147483647, %v163_v28  ;;  %vm169_vm3 = vweird.f32 %v163_v28 }
 0x1a4   :  { %v176_v36 = vor.u32 1.1754944e-38, %v175_v32  ;;  %vm174_vm6 = vcmp.eq.f32.partialorder %v173_v34, 8.507059e+37 }
 0x1a8   :  { %v248_v29 = vpop.eup %247 }
 0x1a9   :  { %v165_v30 = vmul.f32 %v248_v29, %v163_v28  ;;  %vm170_vm2 = vweird.f32 %v248_v29 }
 0x1aa   :  { %vm171_vm4 = vmor %vm169_vm3, %vm170_vm2 }
 0x1ab   :  { %v166_v31 = vsub.f32 1.0, %v165_v30 }
 0x1ad   :  { %v167_v33 = vmul.f32 %v248_v29, %v166_v31 }
 0x1af   :  { %v168_v35 = vadd.f32 %v248_v29, %v167_v33 }
 0x1b1   :  { %v172_v37 = vsel %vm171_vm4, %v248_v29, %v168_v35 }
 0x1b2   :  { %v177_v38 = vsel %vm174_vm6, %v176_v36, %v172_v37 }
 0x1b3   :  { %180 = vst.msk [vmem:[#allocation2] sm:$0x3] %vm179_vm5, %v177_v38 }
 0x1b4   :  { %191 = dma.vmem_to_hbm [thread:$0]  %s187_s5, 32, %s189_s6, [#allocation3]  }
 0x1b5   :  { %273 = dma.done.wait [#allocation3], 32  }
 0x1b6   :  { %274 = vsyncadd [#allocation3], 4294967264 }
 0x1b7   :  { %196 = vsyncpa [#allocation3], 1 }

</bundles_post_ra>
